<compile_context>
chip_gen: v6e
topology: v6e:2x2x1
jax: 0.10.0
libtpu: 0.0.40
codegen_flags: <defaults>
</compile_context>

<pallas_src>
import functools
import math

import jax
import jax.numpy as jnp
from jax.experimental import pallas as pl
from jax.experimental.pallas import tpu as pltpu


# ---------------------------------------------------------------------------
# Parameter ("buffer") setup — mirrors PositionalEncoding.__init__
# ---------------------------------------------------------------------------
def make_positional_encoding(d_model: int, max_len: int = 5000,
                             dtype=jnp.float32) -> jnp.ndarray:
    """Builds the (max_len, 1, d_model) sin/cos buffer, already in the model
    dtype so no per-call cast of the full buffer is ever needed."""
    position = jnp.arange(0, max_len, dtype=jnp.float32)[:, None]           # (max_len, 1)
    div_term = jnp.exp(
        jnp.arange(0, d_model, 2, dtype=jnp.float32)
        * (-math.log(10000.0) / d_model))                                    # (d_model/2,)
    pe = jnp.zeros((max_len, d_model), dtype=jnp.float32)
    pe = pe.at[:, 0::2].set(jnp.sin(position * div_term))
    pe = pe.at[:, 1::2].set(jnp.cos(position * div_term))
    # pe.unsqueeze(0).transpose(0, 1) -> (max_len, 1, d_model)
    return pe[:, None, :].astype(dtype)


# ---------------------------------------------------------------------------
# Pallas kernels
# ---------------------------------------------------------------------------
def _pe_add_strips_kernel(x_ref, pe_ref, o_ref, *, batch: int, d_model: int):
    # x_ref/o_ref: (ts, B*D) lane-dense; pe_ref: (ts, D) with D % 128 == 0.
    # Broadcast over batch with static, lane-aligned strip adds: no concat
    # temp, no extra VMEM pass — each strip goes vld -> vadd -> vst directly.
    pe_tile = pe_ref[...].astype(o_ref.dtype)
    for b in range(batch):
        sl = slice(b * d_model, (b + 1) * d_model)
        o_ref[:, sl] = x_ref[:, sl] + pe_tile


def _pe_add_direct_kernel(x_ref, pe_ref, o_ref):
    # pe_ref either matches x_ref's shape or broadcasts over a size-1 batch
    # axis (3D fallback). pe is cast in-kernel: free VPU work under DMA.
    o_ref[...] = x_ref[...] + pe_ref[...].astype(o_ref.dtype)


# ---------------------------------------------------------------------------
# Tiling helpers
# ---------------------------------------------------------------------------
def _cdiv(a: int, b: int) -> int:
    return (a + b - 1) // b


def _round_up(a: int, m: int) -> int:
    return ((a + m - 1) // m) * m


def _default_target_block_bytes() -> int:
    """4 MiB x-blocks everywhere; 8 MiB on 128-MiB-VMEM chips (v5e/v6e)."""
    try:
        vmem_bytes = int(pltpu.get_tpu_info().vmem_capacity_bytes)
    except Exception:  # conservative fallback: treat as v7x (64 MiB / TC)
        vmem_bytes = 64 * 1024 * 1024
    return 8 * 1024 * 1024 if vmem_bytes >= 128 * 1024 * 1024 else 4 * 1024 * 1024


def _pick_tile_rows(num_rows: int, row_bytes: int, target_bytes: int, sub: int) -> int:
    ts = max(1, target_bytes // max(1, row_bytes))
    # Keep >= ~4 grid steps when possible: lets v7x's two TensorCores split the
    # ("parallel",) grid axis and keeps double-buffered DMA pipelining busy.
    ts = min(ts, _cdiv(num_rows, 4))
    ts = _round_up(max(ts, 1), sub)
    return min(ts, _round_up(num_rows, sub))


# ---------------------------------------------------------------------------
# Wrapper
# ---------------------------------------------------------------------------
def positional_encoding_forward(
    x: jnp.ndarray,
    pe: jnp.ndarray,
    *,
    force_pallas: bool = False,
    target_block_bytes: int | None = None,
) -> jnp.ndarray:
    """x: (S, B, D), pe: (max_len, 1, D) -> (S, B, D). Dropout = eval identity."""
    S, B, D = x.shape
    max_len = pe.shape[0]
    # Edge blocks may read pe rows past S (masked on the write side); pe must
    # simply have >= S valid rows, which the module guarantees (max_len >= S).
    assert max_len >= S and pe.shape[1] == 1 and pe.shape[2] == D

    # Tiny inputs: a fused XLA add is already at roofline; pallas_call launch
    # + per-step overhead would dominate.
    if not force_pallas and x.size * x.dtype.itemsize < 1024 * 1024:
        return x + pe[:S].astype(x.dtype)

    if target_block_bytes is None:
        target_block_bytes = _default_target_block_bytes()

    itemsize = x.dtype.itemsize
    sub = max(8, 32 // itemsize)        # sublane packing: 8 f32 / 16 bf16 / 32 int8
    pe2d = pe.reshape(max_len, D)       # contiguous -> free reshape

    # --- choose a lane-dense layout ---------------------------------------
    layout = None
    if D % 128 == 0:
        layout = "strips"
    elif B == 1:
        g = 128 // math.gcd(D, 128)     # smallest g with (g * D) % 128 == 0
        if S % g == 0 and max_len % g == 0:
            layout = "rowfold"
    if layout is None and (B * D) % 128 == 0:
        layout = "pretile"
    if layout is None:
        layout = "bcast3d"
        # TODO(synk): neither D nor B*D is a multiple of 128 here -> the 3D
        # fallback emits lane-sparse masked stores; a padded-lane layout could
        # recover full-width vst for such shapes.

    cost = pl.CostEstimate(
        flops=int(S * B * D),
        bytes_accessed=int((2 * S * B * D + S * D) * itemsize),
        transcendentals=0,
    )

    def _launch(kernel, x_in, pe_in, x_block, pe_block, grid_rows, ts):
        x_blk_bytes = math.prod(x_block) * itemsize
        pe_blk_bytes = math.prod(pe_block) * pe_in.dtype.itemsize
        # live set: double-buffered x / out / pe blocks + one cast/broadcast
        # temp + headroom; tie the scoped limit to it (never a blind 32 MiB).
        need = 2 * (2 * x_blk_bytes + pe_blk_bytes) \
            + max(x_blk_bytes, pe_blk_bytes) + (4 << 20)
        vmem_limit = int(min(64 << 20, max(16 << 20, need)))
        if len(x_block) == 2:
            idx_map = lambda i: (i, 0)
        else:
            idx_map = lambda i: (i, 0, 0)
        return pl.pallas_call(
            kernel,
            out_shape=jax.ShapeDtypeStruct(x_in.shape, x.dtype),
            grid_spec=pltpu.PrefetchScalarGridSpec(
                num_scalar_prefetch=0,
                grid=(_cdiv(grid_rows, ts),),
                in_specs=[pl.BlockSpec(x_block, idx_map),
                          pl.BlockSpec(pe_block, idx_map)],
                out_specs=pl.BlockSpec(x_block, idx_map),
            ),
            compiler_params=pltpu.CompilerParams(
                dimension_semantics=("parallel",),   # no-op on v5e/v6e, splits v7x TCs
                vmem_limit_bytes=vmem_limit,
            ),
            cost_estimate=cost,
        )(x_in, pe_in)

    if layout == "strips":
        # Lane-dense fold (S, B*D); pe stays (max_len, D), broadcast in-kernel.
        x2 = x.reshape(S, B * D)
        ts = _pick_tile_rows(S, B * D * itemsize, target_block_bytes, sub)
        kernel = functools.partial(_pe_add_strips_kernel, batch=B, d_model=D)
        out2 = _launch(kernel, x2, pe2d, (ts, B * D), (ts, D), S, ts)
        return out2.reshape(S, B, D)

    if layout == "rowfold":
        # B == 1, small D: fold g rows into lanes so g*D % 128 == 0. Both
        # reshapes are free (row-major contiguous); pe rows line up exactly.
        g = 128 // math.gcd(D, 128)
        rows = S // g
        x2 = x.reshape(rows, g * D)
        pe_fold = pe2d.reshape(max_len // g, g * D)
        ts = _pick_tile_rows(rows, g * D * itemsize, target_block_bytes, sub)
        out2 = _launch(_pe_add_direct_kernel, x2, pe_fold,
                       (ts, g * D), (ts, g * D), rows, ts)
        return out2.reshape(S, B, D)

    if layout == "pretile":
        # D % 128 != 0 but B*D % 128 == 0: one wrapper-side tile of pe[:S] to
        # lane width B*D (in x dtype); unmasked full-width stores in the kernel
        # dominate the extra pe read for these small-D shapes.
        x2 = x.reshape(S, B * D)
        pe_tiled = jnp.tile(pe2d[:S].astype(x.dtype), (1, B))
        ts = _pick_tile_rows(S, B * D * itemsize, target_block_bytes, sub)
        out2 = _launch(_pe_add_direct_kernel, x2, pe_tiled,
                       (ts, B * D), (ts, B * D), S, ts)
        return out2.reshape(S, B, D)

    # Fallback: 3D broadcast block (contiguous DMA, tiled & pipelined).
    ts = _pick_tile_rows(S, B * D * itemsize, target_block_bytes, sub)
    return _launch(_pe_add_direct_kernel, x, pe, (ts, B, D), (ts, 1, D), S, ts)


# ---------------------------------------------------------------------------
# Main
# ---------------------------------------------------------------------------
if __name__ == "__main__":
    max_len = 5000
    key = jax.random.PRNGKey(0)
    k1, k2, k3, k4 = jax.random.split(key, 4)

    # --- Test 1: spec-sized small input (S=8, B=2, D=32) -> 3D broadcast fallback
    S, B, D = 8, 2, 32
    x = jax.random.normal(k1, (S, B, D), dtype=jnp.float32)
    pe = make_positional_encoding(D, max_len=max_len)
    out = jax.block_until_ready(positional_encoding_forward(x, pe, force_pallas=True))
    assert out.shape == (S, B, D)
    assert jnp.allclose(out, x + pe[:S], atol=1e-6), "mismatch (bcast3d path)"

    # --- Test 2: B == 1 with small D -> row-group folded lane-dense path
    S, B, D = 64, 1, 32
    x = jax.random.normal(k2, (S, B, D), dtype=jnp.float32)
    pe = make_positional_encoding(D, max_len=max_len)
    out = jax.block_until_ready(positional_encoding_forward(x, pe, force_pallas=True))
    assert jnp.allclose(out, x + pe[:S], atol=1e-6), "mismatch (rowfold path)"

    # --- Test 3: B*D % 128 == 0 but D % 128 != 0 -> pre-tiled pe path
    S, B, D = 40, 4, 32
    x = jax.random.normal(k3, (S, B, D), dtype=jnp.float32)
    pe = make_positional_encoding(D, max_len=max_len)
    out = jax.block_until_ready(positional_encoding_forward(x, pe, force_pallas=True))
    assert jnp.allclose(out, x + pe[:S], atol=1e-6), "mismatch (pretile path)"

    # --- Test 4: D % 128 == 0 -> strip-add path, multi-step grid, partial edge block
    S, B, D = 500, 2, 128
    x = jax.random.normal(k4, (S, B, D), dtype=jnp.float32)
    pe = make_positional_encoding(D, max_len=max_len)
    out = jax.block_until_ready(
        positional_encoding_forward(x, pe, force_pallas=True,
                                    target_block_bytes=64 * 1024))
    assert jnp.allclose(out, x + pe[:S], atol=1e-6), "mismatch (strips path)"

    print("KERNEL_OK")
</pallas_src>

<mosaic_0001>
module attributes {stable_mosaic.version = 11 : i64} {
  func.func @_pe_add_direct_kernel(%arg0: i32, %arg1: memref<8x2x32xf32, #tpu.memory_space<vmem>>, %arg2: memref<8x1x32xf32, #tpu.memory_space<vmem>>, %arg3: memref<8x2x32xf32, #tpu.memory_space<vmem>>) attributes {dimension_semantics = [#tpu.dimension_semantics<parallel>], iteration_bounds = array<i64: 1>, scalar_prefetch = 0 : i64, scratch_operands = 0 : i64, tpu.core_type = #tpu.core_type<tc>, window_params = [{transform_indices = @transform_0, window_bounds = array<i64: 8, 2, 32>}, {transform_indices = @transform_1, window_bounds = array<i64: 8, 1, 32>}, {transform_indices = @transform_2, window_bounds = array<i64: 8, 2, 32>}]} {
    %c0 = arith.constant 0 : index
    %c0_0 = arith.constant 0 : index
    %c0_1 = arith.constant 0 : index
    %0 = vector.load %arg1[%c0, %c0_0, %c0_1] : memref<8x2x32xf32, #tpu.memory_space<vmem>>, vector<8x2x32xf32>
    %c0_2 = arith.constant 0 : index
    %c0_3 = arith.constant 0 : index
    %c0_4 = arith.constant 0 : index
    %1 = vector.load %arg2[%c0_2, %c0_3, %c0_4] : memref<8x1x32xf32, #tpu.memory_space<vmem>>, vector<8x1x32xf32>
    %2 = vector.broadcast %1 : vector<8x1x32xf32> to vector<8x2x32xf32>
    %3 = arith.addf %0, %2 : vector<8x2x32xf32>
    %c0_5 = arith.constant 0 : index
    %c0_6 = arith.constant 0 : index
    %c0_7 = arith.constant 0 : index
    %4 = vector.load %arg3[%c0_5, %c0_6, %c0_7] : memref<8x2x32xf32, #tpu.memory_space<vmem>>, vector<8x2x32xf32>
    tpu.vector_store %arg3[%c0_5, %c0_6, %c0_7], %3 {strides = array<i32>} : memref<8x2x32xf32, #tpu.memory_space<vmem>>, vector<8x2x32xf32>,
    return
  }
  func.func @transform_0(%arg0: i32) -> (i32, i32, i32) {
    %c0_i32 = arith.constant 0 : i32
    %c0_i32_0 = arith.constant 0 : i32
    %c0_i32_1 = arith.constant 0 : i32
    return %arg0, %c0_i32, %c0_i32_0 : i32, i32, i32
  }
  func.func @transform_1(%arg0: i32) -> (i32, i32, i32) {
    %c0_i32 = arith.constant 0 : i32
    %c0_i32_0 = arith.constant 0 : i32
    %c0_i32_1 = arith.constant 0 : i32
    return %arg0, %c0_i32, %c0_i32_0 : i32, i32, i32
  }
  func.func @transform_2(%arg0: i32) -> (i32, i32, i32) {
    %c0_i32 = arith.constant 0 : i32
    %c0_i32_0 = arith.constant 0 : i32
    %c0_i32_1 = arith.constant 0 : i32
    return %arg0, %c0_i32, %c0_i32_0 : i32, i32, i32
  }
}

</mosaic_0001>

<bundles_post_ra>
// kernel: tpu_custom_call.1
= control target key start
LH: loop header
LB: loop body
LE: loop exit
PB: predicated region body
PF: predicated region fallthrough
CT: control target
= control target key end

     0   :  { %vm84_vm0 = vcmask 254976   ;;  %s219_s0 = inlined_call_operand.vmem [shape: f32[8,2,32], index: 0, kind: input, shape index: {}]   ;;  %s220_s1 = inlined_call_operand.vmem [shape: f32[5000,1,32], index: 1, kind: input, shape index: {}]   ;;  %s221_s2 = inlined_call_operand.hbm [shape: f32[8,2,32], index: 2, kind: output, shape index: {}]  }
   0x1   :  { %v12_v0 = vld [vmem:[%s219_s0] sm:$0x3]  ;;  %v13_v3 = vld [vmem:[%s219_s0 + $0x2] sm:$0x3]  ;;  %v14_v5 = vld [vmem:[%s219_s0 + $0x4] sm:$0x3] }
   0x2   :  { %v109_v1 = vld [vmem:[%s220_s1] ss:$0 sm:$0xff]  ;;  %v110_v4 = vld [vmem:[%s220_s1 + $0x1] ss:$0 sm:$0xff]  ;;  %v111_v7 = vld [vmem:[%s220_s1 + $0x2] ss:$0 sm:$0xff] }
   0x3   :  { %v76_v2 = vadd.f32 %v109_v1, %v12_v0  ;;  %v77_v6 = vadd.f32 %v110_v4, %v13_v3  ;;  %v15_v8 = vld [vmem:[%s219_s0 + $0x6] sm:$0x3]  ;;  %v112_v9 = vld [vmem:[%s220_s1 + $0x3] ss:$0 sm:$0xff]  ;;  %v78_v10 = vadd.f32 %v111_v7, %v14_v5  ;;  %v16_v12 = vld [vmem:[%s219_s0 + $0x8] sm:$0x3] }
   0x4   :  { %v79_v11 = vadd.f32 %v112_v9, %v15_v8  ;;  %v113_v13 = vld [vmem:[%s220_s1 + $0x4] ss:$0 sm:$0xff]  ;;  %v17_v14 = vld [vmem:[%s219_s0 + $0xa] sm:$0x3]  ;;  %v114_v16 = vld [vmem:[%s220_s1 + $0x5] ss:$0 sm:$0xff] }
   0x5   :  { %85 = vst.msk [vmem:[#allocation2] sm:$0x3] %vm84_vm0, %v76_v2  ;;  %86 = vst.msk [vmem:[#allocation2 + $0x2] sm:$0x3] %vm84_vm0, %v77_v6  ;;  %v80_v15 = vadd.f32 %v113_v13, %v16_v12  ;;  %v18_v17 = vld [vmem:[%s219_s0 + $0xc] sm:$0x3]  ;;  %v81_v19 = vadd.f32 %v114_v16, %v17_v14 }
   0x6   :  { %v115_v18 = vld [vmem:[%s220_s1 + $0x6] ss:$0 sm:$0xff]  ;;  %87 = vst.msk [vmem:[#allocation2 + $0x4] sm:$0x3] %vm84_vm0, %v78_v10  ;;  %88 = vst.msk [vmem:[#allocation2 + $0x6] sm:$0x3] %vm84_vm0, %v79_v11 }
   0x7   :  { %v82_v20 = vadd.f32 %v115_v18, %v18_v17  ;;  %v19_v21 = vld [vmem:[%s219_s0 + $0xe] sm:$0x3]  ;;  %v116_v22 = vld [vmem:[%s220_s1 + $0x7] ss:$0 sm:$0xff] }
   0x8   :  { %7 = vsyncpa [#allocation3], 0  ;;  %89 = vst.msk [vmem:[#allocation2 + $0x8] sm:$0x3] %vm84_vm0, %v80_v15  ;;  %v83_v23 = vadd.f32 %v116_v22, %v19_v21  ;;  %s142_s13 = smov [#allocation2]  }
   0x9   :  { %s98_s14 = sshll.u32 %s142_s13, 4  ;;  %90 = vst.msk [vmem:[#allocation2 + $0xa] sm:$0x3] %vm84_vm0, %v81_v19  ;;  %91 = vst.msk [vmem:[#allocation2 + $0xc] sm:$0x3] %vm84_vm0, %v82_v20  ;;  %s99_s14 = int_to_ptr.vmem [resolvable:$true] %s98_s14 }
   0xa   :  { %92 = vst.msk [vmem:[#allocation2 + $0xe] sm:$0x3] %vm84_vm0, %v83_v23  ;;  %s120_s15 = scalar_lea.vmem %s99_s14, 256  ;;  %p125_p1 = scmp.lt.s32.totalorder %s99_s14, %s99_s14 }
   0xb   :  { %p121_p0 = scmp.ne.s32.totalorder %s99_s14, %s120_s15  ;;  %p126_p2 = scmp.lt.s32.totalorder %s120_s15, %s120_s15 }
   0xd   :  { %p127_p3 = por %p126_p2, %p125_p1 }
   0xf   :  { %p128_p4 = pnand %p127_p3, %p121_p0 }
  0x11   :  { %131 = shalt.err (!%p128_p4)
}
  0x12   :  { %s143_s0 = smov 32   ;;  %s144_s1 = smov 2  }
  0x13   :  { %104 = dma.vmem_to_hbm [thread:$0]  %s99_s14, 256, %s221_s2, [#allocation3], %s143_s0, %s143_s0, %s144_s1  }
  0x14   :  { %140 = dma.done.wait [#allocation3], 256  }
  0x15   :  { %141 = vsyncadd [#allocation3], 4294967040 }
  0x16   :  { %108 = vsyncpa [#allocation3], 1 }

</bundles_post_ra>
